<compile_context>
chip_gen: v6e
topology: v6e:2x2x1
jax: 0.10.0
libtpu: 0.0.40
codegen_flags: <defaults>
</compile_context>

<pallas_src>
import jax
import jax.numpy as jnp
import numpy as np
from jax.experimental import pallas as pl
from jax.experimental.pallas import tpu as pltpu

_SQRT_2_OVER_PI = 0.7978845608028654


def _gelu_tanh(x):
    # TODO(synk): PyTorch nn.GELU() defaults to the exact erf form; the tanh
    # approximation is used for guaranteed Mosaic lowering (diff ~1e-3).
    return 0.5 * x * (1.0 + jnp.tanh(_SQRT_2_OVER_PI * (x + 0.044715 * x * x * x)))


# ------------------------------ fused kernel --------------------------------
def conv_kernel(idx_ref, x_ref, eattr_ref, bases_ref, w_ref, bias_ref, out_ref):
    n_nodes = x_ref.shape[0]
    n_edges = eattr_ref.shape[0]

    x_feat = x_ref[...]                                    # (N, H)
    idx = idx_ref[...]                                     # (E, 2) int32
    src = idx[:, 0:1]                                      # (E, 1)
    dst = idx[:, 1:2]                                      # (E, 1)

    # One-hot incidence masks built on the VPU (lane iota vs. broadcast index).
    node_iota = jax.lax.broadcasted_iota(jnp.int32, (n_edges, n_nodes), 1)
    src_oh = (node_iota == src).astype(jnp.float32)        # (E, N)
    dst_oh = (node_iota == dst).astype(jnp.float32)        # (E, N)

    w1 = w_ref[0]                                          # (H, H)
    w2 = w_ref[1]                                          # (H, H)  BN1 folded
    w3 = w_ref[2]                                          # (H, H)  BN2 folded
    bias = bias_ref[...]                                   # (3, H) packed
    b1 = bias[0:1, :]
    b2 = bias[1:2, :]
    b3 = bias[2:3, :]

    # Gather x_feat[src] as an MXU matmul: (E, N) @ (N, H) -> (E, H).
    x_src = jnp.dot(src_oh, x_feat, preferred_element_type=jnp.float32)

    # Edge MLP: GELU(Linear1(x_src + edge_attr)) * bases.
    z = x_src + eattr_ref[...]
    h1 = jnp.dot(z, w1, preferred_element_type=jnp.float32) + b1
    xee = _gelu_tanh(h1) * bases_ref[...]                  # (E, H)

    # Scatter-add to destination nodes: aggr[n, :] = sum_e dst_oh[e, n] * xee[e, :].
    aggr = jax.lax.dot_general(
        dst_oh, xee,
        dimension_numbers=(((0,), (0,)), ((), ())),
        preferred_element_type=jnp.float32)                # (N, H)

    # Node FFN (BatchNorm folded into weights/biases) + residuals.
    x = x_feat + aggr                                      # preffn_dropout == identity (eval)
    h = jnp.maximum(jnp.dot(x, w2, preferred_element_type=jnp.float32) + b2, 0.0)
    h = jnp.maximum(jnp.dot(h, w3, preferred_element_type=jnp.float32) + b3, 0.0)
    # ffn_dropout == identity (eval)
    out_ref[...] = (x + h).astype(out_ref.dtype)


def conv_forward(params, x_feat, edge_attr, bases, edge_idx):
    n_nodes, hidden = x_feat.shape
    vmem = lambda: pl.BlockSpec(memory_space=pltpu.MemorySpace.VMEM)
    return pl.pallas_call(
        conv_kernel,
        out_shape=jax.ShapeDtypeStruct((n_nodes, hidden), jnp.float32),
        in_specs=[vmem() for _ in range(6)],
        out_specs=vmem(),
    )(edge_idx, x_feat, edge_attr, bases, params["w"], params["bias"])


# -------------------- parameter prep (once, outside jit) --------------------
def prepare_params(raw):
    """Fold eval-mode BatchNorm affines into the FFN weights; pack weights/biases.

      ReLU(BN1(x @ W2 + b2)) == ReLU(x @ (W2 * s1) + (b2 * s1 + t1))   (same for BN2/W3)
    """
    w2f = raw["w2"] * raw["s1"]
    b2f = raw["b2"] * raw["s1"] + raw["t1"]
    w3f = raw["w3"] * raw["s2"]
    b3f = raw["b3"] * raw["s2"] + raw["t2"]
    w = jnp.stack([raw["w1"], w2f, w3f], axis=0)             # (3, H, H)
    bias = jnp.concatenate([raw["b1"], b2f, b3f], axis=0)    # (3, H)
    return dict(w=w, bias=bias)


# ---------------------------- pure-JAX reference -----------------------------
def conv_reference(raw, x_feat, edge_attr, bases, src, dst):
    n_nodes = x_feat.shape[0]
    x_src = x_feat[src]
    h = (x_src + edge_attr) @ raw["w1"] + raw["b1"]
    xee = _gelu_tanh(h) * bases
    aggr = jax.ops.segment_sum(xee, dst, num_segments=n_nodes)
    x = x_feat + aggr
    h = x @ raw["w2"] + raw["b2"]
    h = jnp.maximum(h * raw["s1"] + raw["t1"], 0.0)
    h = h @ raw["w3"] + raw["b3"]
    h = jnp.maximum(h * raw["s2"] + raw["t2"], 0.0)
    return x + h


# --------------------------------- main --------------------------------------
if __name__ == "__main__":
    N, E, H = 16, 32, 32   # nodes, edges, hidden

    key = jax.random.PRNGKey(0)
    keys = jax.random.split(key, 16)

    # Inputs.
    x_feat = jax.random.normal(keys[0], (N, H), jnp.float32)
    edge_attr = jax.random.normal(keys[1], (E, H), jnp.float32)
    bases = jax.random.normal(keys[2], (E, H), jnp.float32)
    src = jax.random.randint(keys[3], (E,), 0, N)
    dst = jax.random.randint(keys[4], (E,), 0, N)
    edge_idx = jnp.stack([src, dst], axis=1).astype(jnp.int32)      # (E, 2)

    # Parameters (deterministic init; weights stored as (in, out) for x @ W).
    def lin_w(k):
        return jax.random.normal(k, (H, H), jnp.float32) / np.sqrt(H)

    eps = 1e-5
    def bn_affine(kg, kb, km, kv):
        gamma = 1.0 + 0.1 * jax.random.normal(kg, (1, H), jnp.float32)
        beta = 0.1 * jax.random.normal(kb, (1, H), jnp.float32)
        rmean = 0.1 * jax.random.normal(km, (1, H), jnp.float32)
        rvar = 0.5 + jax.random.uniform(kv, (1, H), jnp.float32)
        scale = gamma * jax.lax.rsqrt(rvar + eps)
        shift = beta - rmean * scale
        return scale, shift

    s1, t1 = bn_affine(keys[8], keys[9], keys[10], keys[11])
    s2, t2 = bn_affine(keys[12], keys[13], keys[14], keys[15])

    raw = dict(
        w1=lin_w(keys[5]),
        b1=0.1 * jax.random.normal(keys[6], (1, H), jnp.float32),
        w2=lin_w(keys[7]),
        b2=0.1 * jax.random.normal(jax.random.fold_in(key, 7), (1, H), jnp.float32),
        w3=lin_w(jax.random.fold_in(key, 99)),
        b3=0.1 * jax.random.normal(jax.random.fold_in(key, 100), (1, H), jnp.float32),
        s1=s1, t1=t1, s2=s2, t2=t2,
    )

    # BN fold + weight/bias packing done ONCE, outside the jitted hot path.
    params = prepare_params(raw)

    out = jax.jit(conv_forward)(params, x_feat, edge_attr, bases, edge_idx)
    out = jax.block_until_ready(out)

    ref = conv_reference(raw, x_feat, edge_attr, bases, src, dst)
    np.testing.assert_allclose(np.asarray(out), np.asarray(ref), rtol=1e-4, atol=1e-4)

    print("KERNEL_OK")
</pallas_src>

<mosaic_0001>
module attributes {stable_mosaic.version = 11 : i64} {
  func.func @conv_kernel(%arg0: memref<32x2xi32, #tpu.memory_space<vmem>>, %arg1: memref<16x32xf32, #tpu.memory_space<vmem>>, %arg2: memref<32x32xf32, #tpu.memory_space<vmem>>, %arg3: memref<32x32xf32, #tpu.memory_space<vmem>>, %arg4: memref<3x32x32xf32, #tpu.memory_space<vmem>>, %arg5: memref<3x32xf32, #tpu.memory_space<vmem>>, %arg6: memref<16x32xf32, #tpu.memory_space<vmem>>) attributes {dimension_semantics = [], scalar_prefetch = 0 : i64, scratch_operands = 0 : i64, tpu.core_type = #tpu.core_type<tc>} {
    %c0 = arith.constant 0 : index
    %c0_0 = arith.constant 0 : index
    %0 = vector.load %arg1[%c0, %c0_0] : memref<16x32xf32, #tpu.memory_space<vmem>>, vector<16x32xf32>
    %c0_1 = arith.constant 0 : index
    %c0_2 = arith.constant 0 : index
    %1 = vector.load %arg0[%c0_1, %c0_2] : memref<32x2xi32, #tpu.memory_space<vmem>>, vector<32x2xi32>
    %2 = vector.extract_strided_slice %1 {offsets = [0, 0], sizes = [32, 1], strides = [1, 1]} : vector<32x2xi32> to vector<32x1xi32>
    %3 = vector.extract_strided_slice %1 {offsets = [0, 1], sizes = [32, 1], strides = [1, 1]} : vector<32x2xi32> to vector<32x1xi32>
    %4 = tpu.iota {dimensions = array<i32: 1>} : vector<32x16xi32>
    %5 = vector.broadcast %2 : vector<32x1xi32> to vector<32x16xi32>
    %6 = arith.cmpi eq, %4, %5 : vector<32x16xi32>
    %7 = arith.extui %6 : vector<32x16xi1> to vector<32x16xi32>
    %8 = arith.sitofp %7 : vector<32x16xi32> to vector<32x16xf32>
    %9 = vector.broadcast %3 : vector<32x1xi32> to vector<32x16xi32>
    %10 = arith.cmpi eq, %4, %9 : vector<32x16xi32>
    %11 = arith.extui %10 : vector<32x16xi1> to vector<32x16xi32>
    %12 = arith.sitofp %11 : vector<32x16xi32> to vector<32x16xf32>
    %c0_3 = arith.constant 0 : index
    %c0_4 = arith.constant 0 : index
    %c0_5 = arith.constant 0 : index
    %13 = vector.load %arg4[%c0_3, %c0_4, %c0_5] : memref<3x32x32xf32, #tpu.memory_space<vmem>>, vector<1x32x32xf32>
    %14 = vector.shape_cast %13 : vector<1x32x32xf32> to vector<32x32xf32>
    %c1 = arith.constant 1 : index
    %c0_6 = arith.constant 0 : index
    %c0_7 = arith.constant 0 : index
    %15 = vector.load %arg4[%c1, %c0_6, %c0_7] : memref<3x32x32xf32, #tpu.memory_space<vmem>>, vector<1x32x32xf32>
    %16 = vector.shape_cast %15 : vector<1x32x32xf32> to vector<32x32xf32>
    %c2 = arith.constant 2 : index
    %c0_8 = arith.constant 0 : index
    %c0_9 = arith.constant 0 : index
    %17 = vector.load %arg4[%c2, %c0_8, %c0_9] : memref<3x32x32xf32, #tpu.memory_space<vmem>>, vector<1x32x32xf32>
    %18 = vector.shape_cast %17 : vector<1x32x32xf32> to vector<32x32xf32>
    %c0_10 = arith.constant 0 : index
    %c0_11 = arith.constant 0 : index
    %19 = vector.load %arg5[%c0_10, %c0_11] : memref<3x32xf32, #tpu.memory_space<vmem>>, vector<3x32xf32>
    %20 = vector.extract_strided_slice %19 {offsets = [0, 0], sizes = [1, 32], strides = [1, 1]} : vector<3x32xf32> to vector<1x32xf32>
    %21 = vector.extract_strided_slice %19 {offsets = [1, 0], sizes = [1, 32], strides = [1, 1]} : vector<3x32xf32> to vector<1x32xf32>
    %22 = vector.extract_strided_slice %19 {offsets = [2, 0], sizes = [1, 32], strides = [1, 1]} : vector<3x32xf32> to vector<1x32xf32>
    %cst = arith.constant dense<0.000000e+00> : vector<32x32xf32>
    %23 = tpu.matmul %8, %0, %cst {dimension_numbers = #tpu.dot_dimension_numbers<[1], [0], [0], [1], [0, 0, 1, 1], [], []>} : vector<32x16xf32>, vector<16x32xf32>, vector<32x32xf32> -> vector<32x32xf32>
    %c0_12 = arith.constant 0 : index
    %c0_13 = arith.constant 0 : index
    %24 = vector.load %arg2[%c0_12, %c0_13] : memref<32x32xf32, #tpu.memory_space<vmem>>, vector<32x32xf32>
    %25 = arith.addf %23, %24 : vector<32x32xf32>
    %cst_14 = arith.constant dense<0.000000e+00> : vector<32x32xf32>
    %26 = tpu.matmul %25, %14, %cst_14 {dimension_numbers = #tpu.dot_dimension_numbers<[1], [0], [0], [1], [0, 0, 1, 1], [], []>} : vector<32x32xf32>, vector<32x32xf32>, vector<32x32xf32> -> vector<32x32xf32>
    %27 = vector.broadcast %20 : vector<1x32xf32> to vector<32x32xf32>
    %28 = arith.addf %26, %27 : vector<32x32xf32>
    %cst_15 = arith.constant 5.000000e-01 : f32
    %29 = vector.broadcast %cst_15 : f32 to vector<32x32xf32>
    %30 = arith.mulf %29, %28 : vector<32x32xf32>
    %cst_16 = arith.constant 4.471500e-02 : f32
    %31 = vector.broadcast %cst_16 : f32 to vector<32x32xf32>
    %32 = arith.mulf %31, %28 : vector<32x32xf32>
    %33 = arith.mulf %32, %28 : vector<32x32xf32>
    %34 = arith.mulf %33, %28 : vector<32x32xf32>
    %35 = arith.addf %28, %34 : vector<32x32xf32>
    %cst_17 = arith.constant 0.797884583 : f32
    %36 = vector.broadcast %cst_17 : f32 to vector<32x32xf32>
    %37 = arith.mulf %36, %35 : vector<32x32xf32>
    %38 = math.tanh %37 : vector<32x32xf32>
    %cst_18 = arith.constant 1.000000e+00 : f32
    %39 = vector.broadcast %cst_18 : f32 to vector<32x32xf32>
    %40 = arith.addf %39, %38 : vector<32x32xf32>
    %41 = arith.mulf %30, %40 : vector<32x32xf32>
    %c0_19 = arith.constant 0 : index
    %c0_20 = arith.constant 0 : index
    %42 = vector.load %arg3[%c0_19, %c0_20] : memref<32x32xf32, #tpu.memory_space<vmem>>, vector<32x32xf32>
    %43 = arith.mulf %41, %42 : vector<32x32xf32>
    %cst_21 = arith.constant dense<0.000000e+00> : vector<16x32xf32>
    %44 = tpu.matmul %12, %43, %cst_21 {dimension_numbers = #tpu.dot_dimension_numbers<[0], [0], [1], [1], [0, 1, 1, 1], [], []>} : vector<32x16xf32>, vector<32x32xf32>, vector<16x32xf32> -> vector<16x32xf32>
    %45 = arith.addf %0, %44 : vector<16x32xf32>
    %cst_22 = arith.constant dense<0.000000e+00> : vector<16x32xf32>
    %46 = tpu.matmul %45, %16, %cst_22 {dimension_numbers = #tpu.dot_dimension_numbers<[1], [0], [0], [1], [0, 0, 1, 1], [], []>} : vector<16x32xf32>, vector<32x32xf32>, vector<16x32xf32> -> vector<16x32xf32>
    %47 = vector.broadcast %21 : vector<1x32xf32> to vector<16x32xf32>
    %48 = arith.addf %46, %47 : vector<16x32xf32>
    %cst_23 = arith.constant 0.000000e+00 : f32
    %49 = vector.broadcast %cst_23 : f32 to vector<16x32xf32>
    %50 = arith.maximumf %48, %49 : vector<16x32xf32>
    %cst_24 = arith.constant dense<0.000000e+00> : vector<16x32xf32>
    %51 = tpu.matmul %50, %18, %cst_24 {dimension_numbers = #tpu.dot_dimension_numbers<[1], [0], [0], [1], [0, 0, 1, 1], [], []>} : vector<16x32xf32>, vector<32x32xf32>, vector<16x32xf32> -> vector<16x32xf32>
    %52 = vector.broadcast %22 : vector<1x32xf32> to vector<16x32xf32>
    %53 = arith.addf %51, %52 : vector<16x32xf32>
    %cst_25 = arith.constant 0.000000e+00 : f32
    %54 = vector.broadcast %cst_25 : f32 to vector<16x32xf32>
    %55 = arith.maximumf %53, %54 : vector<16x32xf32>
    %56 = arith.addf %45, %55 : vector<16x32xf32>
    %c0_26 = arith.constant 0 : index
    %c0_27 = arith.constant 0 : index
    %57 = vector.load %arg6[%c0_26, %c0_27] : memref<16x32xf32, #tpu.memory_space<vmem>>, vector<16x32xf32>
    tpu.vector_store %arg6[%c0_26, %c0_27], %56 {strides = array<i32>} : memref<16x32xf32, #tpu.memory_space<vmem>>, vector<16x32xf32>,
    return
  }
}

</mosaic_0001>

<bundles_post_ra>
// kernel: conv_forward.1
= control target key start
LH: loop header
LB: loop body
LE: loop exit
PB: predicated region body
PF: predicated region fallthrough
CT: control target
= control target key end

     0   :  { %11 = vsyncpa [#allocation3], 0  ;;  %s1042_s0 = inlined_call_operand.vmem [shape: s32[32,2], index: 0, kind: input, shape index: {}]   ;;  %s1043_s1 = inlined_call_operand.hbm [shape: f32[16,32], index: 1, kind: input, shape index: {}]   ;;  %s1044_s2 = inlined_call_operand.vmem [shape: f32[32,32], index: 2, kind: input, shape index: {}]   ;;  %s1045_s3 = inlined_call_operand.hbm [shape: f32[32,32], index: 3, kind: input, shape index: {}]   ;;  %s1046_s4 = inlined_call_operand.hbm [shape: f32[3,32,32], index: 4, kind: input, shape index: {}]   ;;  %s1047_s5 = inlined_call_operand.vmem [shape: f32[3,32], index: 5, kind: input, shape index: {}]   ;;  %s1048_s6 = inlined_call_operand.hbm [shape: f32[16,32], index: 6, kind: output, shape index: {}]  }
   0x1   :  { %12 = vsyncpa [#allocation6], 0 }
   0x2   :  { %13 = vsyncpa [#allocation4], 0  ;;  %s913_s21 = smov [#allocation5]   ;;  %s914_s23 = smov [#allocation2]  }
   0x3   :  { %s35_s22 = sshll.u32 %s913_s21, 4  ;;  %s21_s24 = sshll.u32 %s914_s23, 4  ;;  %s36_s22 = int_to_ptr.vmem [resolvable:$true] %s35_s22  ;;  %s22_s24 = int_to_ptr.vmem [resolvable:$true] %s21_s24 }
   0x4   :  { %s835_s25 = scalar_lea.vmem %s36_s22, 512  ;;  %p840_p1 = scmp.lt.s32.totalorder %s36_s22, %s36_s22 }
   0x5   :  { %p836_p0 = scmp.ne.s32.totalorder %s36_s22, %s835_s25  ;;  %p841_p2 = scmp.lt.s32.totalorder %s835_s25, %s835_s25 }
   0x7   :  { %p842_p3 = por %p841_p2, %p840_p1 }
   0x9   :  { %p843_p4 = pnand %p842_p3, %p836_p0 }
   0xb   :  { %846 = shalt.err (!%p843_p4)
}
   0xc   :  { %s915_s26 = smov 128   ;;  %s916_s27 = smov 8  }
   0xd   :  { %41 = dma.hbm_to_vmem [thread:$0]  %s1045_s3, 512, %s36_s22, [#allocation6], %s915_s26, %s915_s26, %s916_s27  }
   0xe   :  { %s855_s30 = scalar_lea.vmem %s22_s24, 256  ;;  %p860_p6 = scmp.lt.s32.totalorder %s22_s24, %s22_s24 }
   0xf   :  { %p856_p5 = scmp.ne.s32.totalorder %s22_s24, %s855_s30  ;;  %p861_p7 = scmp.lt.s32.totalorder %s855_s30, %s855_s30 }
  0x11   :  { %p862_p8 = por %p861_p7, %p860_p6 }
  0x13   :  { %p863_p9 = pnand %p862_p8, %p856_p5 }
  0x15   :  { %866 = shalt.err (!%p863_p9)
}
  0x16   :  { %27 = dma.hbm_to_vmem [thread:$0]  %s1043_s1, 256, %s22_s24, [#allocation3], %s915_s26, %s915_s26, %s916_s27  }
  0x17   :  { %s917_s9 = smov [#allocation7]  }
  0x18   :  { %s47_s10 = sshll.u32 %s917_s9, 4  ;;  %s48_s10 = int_to_ptr.vmem [resolvable:$true] %s47_s10 }
  0x19   :  { %s875_s11 = scalar_lea.vmem %s48_s10, 1536  ;;  %p880_p11 = scmp.lt.s32.totalorder %s48_s10, %s48_s10 }
  0x1a   :  { %p876_p10 = scmp.ne.s32.totalorder %s48_s10, %s875_s11  ;;  %p881_p12 = scmp.lt.s32.totalorder %s875_s11, %s875_s11 }
  0x1c   :  { %p882_p13 = por %p881_p12, %p880_p11 }
  0x1e   :  { %p883_p0 = pnand %p882_p13, %p876_p10 }
  0x20   :  { %886 = shalt.err (!%p883_p0)
}
  0x21   :  { %53 = dma.hbm_to_vmem [thread:$0]  %s1046_s4, 1536, %s48_s10, [#allocation6], %s915_s26, %s915_s26, %s916_s27  }
  0x22   :  { %907 = dma.done.wait [#allocation3], 256  }
  0x23   :  { %908 = vsyncadd [#allocation3], 4294967040 }
  0x24   :  { %909 = dma.done.wait [#allocation6], 2048  }
  0x25   :  { %910 = vsyncadd [#allocation6], 4294965248  ;;  %v918_v0 = vmov 0   ;;  %v69_v1 = vld [vmem:[%s1042_s0 + $0x10] sm:$0xff]  ;;  %v67_v2 = vld [vmem:[%s1042_s0] sm:$0xff]  ;;  %v919_v8 = vmov 1   ;;  %v71_v9 = vlaneseq }
  0x26   :  { %816 = vset.pattern.permute.xlu1 %v918_v0  ;;  %815 = vset.pattern.permute.xlu0 %v918_v0  ;;  %v981_v3 = vld [vmem:[#allocation2 + $0x8] sm:$0xff]  ;;  %v983_v4 = vld [vmem:[#allocation2] sm:$0xff]  ;;  %v70_v5 = vld [vmem:[%s1042_s0 + $0x18] sm:$0xff]  ;;  %vm140_vm0 = vcmask 130048   ;;  %v920_v13 = vmov 0.0   ;;  %vm242_vm9 = vcmask 261120  }
  0x27   :  { %80 = vperm.xlu1 %816, %v69_v1   ;;  %74 = vperm.xlu0 %815, %v67_v2   ;;  %v68_v6 = vld [vmem:[%s1042_s0 + $0x8] sm:$0xff]  ;;  %v72_v10 = vand.u32 127, %v71_v9  ;;  %v123_v20 = vld [vmem:[#allocation7 + $0x10] sm:$0xff]  ;;  %v122_v21 = vld [vmem:[#allocation7 + $0x8] sm:$0xff]  ;;  %v1014_v45 = vshrl.u32 %v71_v9, 7 }
  0x28   :  { %749 = vmatprep.subr.mxu0 %v981_v3  ;;  %v124_v7 = vld [vmem:[#allocation7 + $0x18] sm:$0xff]  ;;  %v121_v22 = vld [vmem:[#allocation7] sm:$0xff]  ;;  %v136_v32 = vld [vmem:[%s1044_s2] sm:$0xff] }
  0x29   :  { %750 = vmatpush3.msra.mxu0 %v981_v3  ;;  %759 = vmatprep.subr.mxu1 %v124_v7  ;;  %v137_v33 = vld [vmem:[%s1044_s2 + $0x8] sm:$0xff]  ;;  %v138_v38 = vld [vmem:[%s1044_s2 + $0x10] sm:$0xff]  ;;  %v139_v39 = vld [vmem:[%s1044_s2 + $0x18] sm:$0xff]  ;;  %v240_v46 = vsub.s32 0, %v1014_v45 }
  0x2a   :  { %751 = vmatprep.subr.mxu0 %v983_v4  ;;  %760 = vmatpush3.msra.mxu1 %v124_v7  ;;  %v129_v44 = vld [vmem:[#allocation7 + $0x38] sm:$0xff]  ;;  %v1020_v47 = vld [vmem:[%s1047_s5] sm:$0x7]  ;;  %s921_s5 = smov [#allocation8]  }
  0x2b   :  { %83 = vperm.xlu1 %816, %v70_v5   ;;  %77 = vperm.xlu0 %815, %v68_v6   ;;  %v241_v48 = vrot.slane %v1020_v47, %v240_v46  ;;  %s682_s29 = sshll.u32 %s921_s5, 4  ;;  %s683_s29 = int_to_ptr.vmem [resolvable:$true] %s682_s29 }
  0x2c   :  { %752 = vmatpush3.msra.mxu0 %v983_v4  ;;  %761 = vmatprep.subr.mxu1 %v123_v20  ;;  %s887_s30 = scalar_lea.vmem %s683_s29, 256  ;;  %p892_p2 = scmp.lt.s32.totalorder %s683_s29, %s683_s29 }
  0x2d   :  { %762 = vmatpush3.msra.mxu1 %v123_v20  ;;  %p888_p1 = scmp.ne.s32.totalorder %s683_s29, %s887_s30  ;;  %p893_p3 = scmp.lt.s32.totalorder %s887_s30, %s887_s30 }
  0x2e   :  { %763 = vmatprep.subr.mxu1 %v122_v21 }
  0x2f   :  { %817 = vset.pattern.permute.xlu0 %v919_v8  ;;  %818 = vset.pattern.permute.xlu1 %v919_v8  ;;  %p894_p4 = por %p893_p3, %p892_p2 }
  0x30   :  { %98 = vperm.xlu0 %817, %v67_v2   ;;  %101 = vperm.xlu1 %818, %v68_v6  }
  0x31   :  { %764 = vmatpush3.msra.mxu1 %v122_v21  ;;  %p895_p5 = pnand %p894_p4, %p888_p1 }
  0x32   :  { %765 = vmatprep.subr.mxu1 %v121_v22 }
  0x33   :  { %766 = vmatpush3.msra.mxu1 %v121_v22  ;;  %v379_v22 = vld [vmem:[#allocation5 + $0x18] sm:$0xff] }
  0x34   :  { %104 = vperm.xlu1 %818, %v69_v1   ;;  %107 = vperm.xlu0 %817, %v70_v5  }
  0x35   :  { %784 = vmatprep.subr.mxu1 %v129_v44 }
  0xa2   :  { %v81_v11 = vpop.permute.xlu1 %80  ;;  %v75_v12 = vpop.permute.xlu0 %74 }
  0xa3   :  { %vm85_vm1 = vcmp.eq.s32.totalorder %v72_v10, %v75_v12  ;;  %vm87_vm2 = vcmp.eq.s32.totalorder %v72_v10, %v81_v11 }
  0xa4   :  { %v695_v14 = vsel %vm85_vm1, 1.0, %v920_v13  ;;  %v697_v17 = vsel %vm87_vm2, 1.0, %v920_v13 }
  0xa5   :  { %753 = vmatprep.mubr.msk.f32.mxu0 %vm140_vm0, %v695_v14 }
  0xa6   :  { %v84_v15 = vpop.permute.xlu1 %83  ;;  %v78_v16 = vpop.permute.xlu0 %77 }
  0xa7   :  { %vm86_vm3 = vcmp.eq.s32.totalorder %v72_v10, %v78_v16  ;;  %vm88_vm4 = vcmp.eq.s32.totalorder %v72_v10, %v84_v15 }
  0xa8   :  { %v696_v18 = vsel %vm86_vm3, 1.0, %v920_v13  ;;  %v698_v19 = vsel %vm88_vm4, 1.0, %v920_v13 }
  0xa9   :  { %754 = vmatmul.mubr.msk.f32.vlgmr.msra.gmra.mxu0 %vm140_vm0, %v696_v18 }
  0xaa   :  { %756 = vmatprep.mubr.msk.f32.mxu0 %vm140_vm0, %v697_v17 }
  0xab   :  { %v99_v23 = vpop.permute.xlu0 %98  ;;  %v102_v24 = vpop.permute.xlu1 %101 }
  0xac   :  { %vm109_vm5 = vcmp.eq.s32.totalorder %v72_v10, %v99_v23  ;;  %vm110_vm6 = vcmp.eq.s32.totalorder %v72_v10, %v102_v24 }
  0xad   :  { %757 = vmatmul.mubr.msk.f32.gmra.mxu0 %vm140_vm0, %v698_v19  ;;  %v699_v25 = vsel %vm109_vm5, 1.0, %v920_v13  ;;  %v700_v26 = vsel %vm110_vm6, 1.0, %v920_v13 }
  0xae   :  { %384 = vxpose.xlu1.b32.start [1/4] (short) (narrow) %v699_v25, 16 }
  0xaf   :  { %v105_v27 = vpop.permute.xlu1 %104  ;;  %v108_v28 = vpop.permute.xlu0 %107 }
  0xb0   :  { %vm111_vm7 = vcmp.eq.s32.totalorder %v72_v10, %v105_v27  ;;  %vm112_vm8 = vcmp.eq.s32.totalorder %v72_v10, %v108_v28  ;;  %v378_v28 = vld [vmem:[#allocation5 + $0x10] sm:$0xff] }
  0xb1   :  { %v701_v29 = vsel %vm111_vm7, 1.0, %v920_v13  ;;  %v702_v30 = vsel %vm112_vm8, 1.0, %v920_v13 }
  0xb2   :  { %385 = vxpose.xlu1.b32.cont [2/4] (short) (narrow) %v700_v26, 16 }
  0xb6   :  { %386 = vxpose.xlu1.b32.cont [3/4] (short) (narrow) %v701_v29, 16 }
  0xba   :  { %387 = vxpose.xlu1.b32.end [4/4] (short) (narrow) %v702_v30, 16 }
 0x12a   :  { %v400_v43 = vpop.trf.xlu1 }
 0x12b   :  { %781 = vmatprep.mubr.msk.f32.mxu0 %vm242_vm9, %v400_v43 }
 0x169   :  { %v755_v31 = vpop.f32.mrf.mxu0 }
 0x16a   :  { %v225_v36 = vadd.f32 %v755_v31, %v137_v33  ;;  %v377_v33 = vld [vmem:[#allocation5 + $0x8] sm:$0xff] }
 0x16b   :  { %v219_v34 = vpop.f32.mrf.mxu0 }
 0x16c   :  { %v220_v35 = vadd.f32 %v219_v34, %v136_v32 }
 0x16d   :  { %v758_v37 = vpop.f32.mrf.mxu0 }
 0x16e   :  { %767 = vmatprep.mubr.msk.f32.mxu1 %vm242_vm9, %v220_v35  ;;  %v235_v42 = vadd.f32 %v758_v37, %v139_v39  ;;  %v401_v39 = vpop.trf.xlu1 }
 0x16f   :  { %v229_v40 = vpop.f32.mrf.mxu0  ;;  %768 = vmatmul.mubr.msk.f32.vlgmr.msra.gmra.mxu1 %vm242_vm9, %v225_v36  ;;  %v376_v36 = vld [vmem:[#allocation5] sm:$0xff] }
 0x170   :  { %v230_v41 = vadd.f32 %v229_v40, %v138_v38  ;;  %785 = vmatpush3.msra.mxu1 %v129_v44  ;;  %v128_v40 = vld [vmem:[#allocation7 + $0x30] sm:$0xff] }
 0x171   :  { %786 = vmatprep.subr.mxu1 %v128_v40 }
 0x172   :  { %770 = vmatprep.mubr.msk.f32.mxu1 %vm242_vm9, %v230_v41  ;;  %787 = vmatpush3.msra.mxu1 %v128_v40  ;;  %v127_v41 = vld [vmem:[#allocation7 + $0x28] sm:$0xff] }
 0x173   :  { %771 = vmatmul.mubr.msk.f32.gmra.mxu1 %vm242_vm9, %v235_v42  ;;  %788 = vmatprep.subr.mxu1 %v127_v41  ;;  %v126_v42 = vld [vmem:[#allocation7 + $0x20] sm:$0xff] }
 0x174   :  { %789 = vmatpush3.msra.mxu1 %v127_v41 }
 0x175   :  { %790 = vmatprep.subr.mxu1 %v126_v42 }
 0x176   :  { %791 = vmatpush3.msra.mxu1 %v126_v42 }
 0x22f   :  { %v769_v49 = vpop.f32.mrf.mxu1 }
 0x230   :  { %v327_v50 = vadd.f32 %v769_v49, %v241_v48  ;;  %v134_v49 = vld [vmem:[#allocation7 + $0x58] sm:$0xff] }
 0x231   :  { %v321_v51 = vpop.f32.mrf.mxu1 }
 0x232   :  { %v345_v52 = vmul.f32 0.044715, %v327_v50  ;;  %v322_v53 = vadd.f32 %v321_v51, %v241_v48  ;;  %v341_v23 = vmul.f32 0.5, %v327_v50  ;;  %v132_v51 = vld [vmem:[#allocation7 + $0x48] sm:$0xff] }
 0x233   :  { %v772_v54 = vpop.f32.mrf.mxu1 }
 0x234   :  { %v349_v55 = vmul.f32 %v345_v52, %v327_v50  ;;  %v344_v56 = vmul.f32 0.044715, %v322_v53  ;;  %v337_v57 = vadd.f32 %v772_v54, %v241_v48  ;;  %v340_v32 = vmul.f32 0.5, %v322_v53  ;;  %v131_v52 = vld [vmem:[#allocation7 + $0x40] sm:$0xff] }
 0x235   :  { %v331_v58 = vpop.f32.mrf.mxu1 }
 0x236   :  { %v353_v59 = vmul.f32 %v349_v55, %v327_v50  ;;  %v348_v60 = vmul.f32 %v344_v56, %v322_v53  ;;  %v347_v61 = vmul.f32 0.044715, %v337_v57  ;;  %v332_v62 = vadd.f32 %v331_v58, %v241_v48 }
 0x237   :  { %v343_v18 = vmul.f32 0.5, %v337_v57 }
 0x238   :  { %v352_v63 = vmul.f32 %v348_v60, %v322_v53  ;;  %v351_v0 = vmul.f32 %v347_v61, %v337_v57  ;;  %v346_v1 = vmul.f32 0.044715, %v332_v62  ;;  %v357_v2 = vadd.f32 %v353_v59, %v327_v50  ;;  %v133_v50 = vld [vmem:[#allocation7 + $0x50] sm:$0xff] }
 0x239   :  { %v342_v25 = vmul.f32 0.5, %v332_v62  ;;  %v588_v59 = vsub.s32 2, %v1014_v45 }
 0x23a   :  { %v355_v5 = vmul.f32 %v351_v0, %v337_v57  ;;  %v350_v6 = vmul.f32 %v346_v1, %v332_v62  ;;  %v356_v7 = vadd.f32 %v352_v63, %v322_v53  ;;  %v361_v8 = vmul.f32 0.7978846, %v357_v2 }
 0x23b   :  { %v589_v60 = vrot.slane %v1020_v47, %v588_v59 }
 0x23c   :  { %v354_v9 = vmul.f32 %v350_v6, %v332_v62  ;;  %v359_v10 = vadd.f32 %v355_v5, %v337_v57  ;;  %v360_v11 = vmul.f32 0.7978846, %v356_v7  ;;  %819 = vtanh.f32 %v361_v8 }
 0x23e   :  { %v363_v12 = vmul.f32 0.7978846, %v359_v10  ;;  %v358_v13 = vadd.f32 %v354_v9, %v332_v62  ;;  %821 = vtanh.f32 %v360_v11 }
 0x240   :  { %823 = vtanh.f32 %v363_v12  ;;  %v362_v14 = vmul.f32 0.7978846, %v358_v13 }
 0x242   :  { %825 = vtanh.f32 %v362_v14 }
 0x249   :  { %v820_v15 = vpop.eup %819 }
 0x24a   :  { %v369_v20 = vadd.f32 1.0, %v820_v15 }
 0x24b   :  { %v822_v16 = vpop.eup %821 }
 0x24c   :  { %v368_v27 = vadd.f32 1.0, %v822_v16  ;;  %v373_v31 = vmul.f32 %v369_v20, %v341_v23 }
 0x24d   :  { %v824_v17 = vpop.eup %823 }
 0x24e   :  { %v371_v19 = vadd.f32 1.0, %v824_v17  ;;  %v372_v35 = vmul.f32 %v368_v27, %v340_v32  ;;  %v381_v37 = vmul.f32 %v377_v33, %v373_v31 }
 0x24f   :  { %v826_v21 = vpop.eup %825 }
 0x250   :  { %v375_v24 = vmul.f32 %v371_v19, %v343_v18  ;;  %v370_v26 = vadd.f32 1.0, %v826_v21  ;;  %v380_v38 = vmul.f32 %v376_v36, %v372_v35 }
 0x252   :  { %v383_v29 = vmul.f32 %v379_v22, %v375_v24  ;;  %v374_v30 = vmul.f32 %v370_v26, %v342_v25 }
 0x254   :  { %773 = vmatprep.subr.mxu0 %v383_v29  ;;  %v382_v34 = vmul.f32 %v378_v28, %v374_v30 }
 0x255   :  { %774 = vmatpush3.msra.mxu0 %v383_v29 }
 0x256   :  { %775 = vmatprep.subr.mxu0 %v382_v34 }
 0x257   :  { %776 = vmatpush3.msra.mxu0 %v382_v34 }
 0x258   :  { %777 = vmatprep.subr.mxu0 %v381_v37 }
 0x259   :  { %778 = vmatpush3.msra.mxu0 %v381_v37 }
 0x25a   :  { %779 = vmatprep.subr.mxu0 %v380_v38 }
 0x25b   :  { %780 = vmatpush3.msra.mxu0 %v380_v38 }
 0x25c   :  { %782 = vmatmul.mubr.msk.f32.vlgmr.msra.gmra.mxu0 %vm242_vm9, %v401_v39  ;;  %795 = vmatprep.subr.mxu0 %v134_v49 }
 0x25d   :  { %796 = vmatpush3.msra.mxu0 %v134_v49 }
 0x25e   :  { %797 = vmatprep.subr.mxu0 %v133_v50 }
 0x25f   :  { %798 = vmatpush3.msra.mxu0 %v133_v50 }
 0x260   :  { %799 = vmatprep.subr.mxu0 %v132_v51 }
 0x261   :  { %800 = vmatpush3.msra.mxu0 %v132_v51 }
 0x262   :  { %801 = vmatprep.subr.mxu0 %v131_v52 }
 0x263   :  { %802 = vmatpush3.msra.mxu0 %v131_v52 }
 0x31c   :  { %v783_v43 = vpop.f32.mrf.mxu0 }
 0x31d   :  { %v498_v48 = vadd.f32 %v783_v43, %v981_v3 }
 0x31e   :  { %v488_v44 = vpop.f32.mrf.mxu0 }
 0x31f   :  { %v497_v46 = vadd.f32 %v488_v44, %v983_v4  ;;  %v501_v4 = vsub.s32 1, %v1014_v45 }
 0x321   :  { %792 = vmatprep.mubr.msk.f32.mxu1 %vm242_vm9, %v497_v46  ;;  %v502_v3 = vrot.slane %v1020_v47, %v501_v4 }
 0x322   :  { %793 = vmatmul.mubr.msk.f32.vlgmr.msra.gmra.mxu1 %vm242_vm9, %v498_v48 }
 0x3e2   :  { %v794_v53 = vpop.f32.mrf.mxu1 }
 0x3e3   :  { %v581_v54 = vadd.f32 %v794_v53, %v502_v3 }
 0x3e4   :  { %v575_v55 = vpop.f32.mrf.mxu1 }
 0x3e5   :  { %v576_v56 = vadd.f32 %v575_v55, %v502_v3  ;;  %v585_v58 = vmax.f32 %v581_v54, 0.0 }
 0x3e7   :  { %v584_v57 = vmax.f32 %v576_v56, 0.0 }
 0x3e9   :  { %803 = vmatprep.mubr.msk.f32.mxu0 %vm242_vm9, %v584_v57 }
 0x3ea   :  { %804 = vmatmul.mubr.msk.f32.vlgmr.msra.gmra.mxu0 %vm242_vm9, %v585_v58 }
 0x4aa   :  { %v805_v61 = vpop.f32.mrf.mxu0 }
 0x4ab   :  { %v668_v62 = vadd.f32 %v805_v61, %v589_v60 }
 0x4ac   :  { %v662_v63 = vpop.f32.mrf.mxu0 }
 0x4ad   :  { %v672_v0 = vmax.f32 %v668_v62, 0.0  ;;  %v663_v1 = vadd.f32 %v662_v63, %v589_v60 }
 0x4af   :  { %v674_v2 = vadd.f32 %v672_v0, %v498_v48  ;;  %v671_v5 = vmax.f32 %v663_v1, 0.0 }
 0x4b1   :  { %676 = vst.msk [vmem:[#allocation8 + $0x8] sm:$0xff] %vm242_vm9, %v674_v2  ;;  %v673_v6 = vadd.f32 %v671_v5, %v497_v46 }
 0x4b3   :  { %675 = vst.msk [vmem:[#allocation8] sm:$0xff] %vm242_vm9, %v673_v6 }
 0x4b4   :  { %898 = shalt.err (!%p895_p5)
}
 0x4b5   :  { %688 = dma.vmem_to_hbm [thread:$0]  %s683_s29, 256, %s1048_s6, [#allocation4], %s915_s26, %s915_s26, %s916_s27  }
 0x4b6   :  { %911 = dma.done.wait [#allocation4], 256  }
 0x4b7   :  { %912 = vsyncadd [#allocation4], 4294967040 }
 0x4b8   :  { %692 = vsyncpa [#allocation3], 1 }
 0x4b9   :  { %693 = vsyncpa [#allocation6], 1 }
 0x4ba   :  { %694 = vsyncpa [#allocation4], 1 }

</bundles_post_ra>
